<compile_context>
chip_gen: v7x
topology: tpu7x:2x2x1
jax: 0.10.0
libtpu: 0.0.40
codegen_flags: <defaults>
</compile_context>

<pallas_src>
import jax
import jax.numpy as jnp
from jax import lax
from jax.experimental import pallas as pl
from jax.experimental.pallas import tpu as pltpu


def make_got_kernel(tau: float, it: int):
    """Builds the Pallas kernel body with tau / iteration count baked in."""
    inv_tau = 1.0 / float(tau)

    def kernel(mean_ref, std_ref, eps_ref, out_ref):
        # Elementwise noisy-parameter construction (VPU).
        a0 = (mean_ref[...] + std_ref[...] * eps_ref[...]) * inv_tau

        if it <= 0:
            out_ref[...] = jnp.exp(a0)
            return

        # Row-max stabilization; the per-row shift is absorbed into u, so the
        # iterates are identical to the log-domain ones (exact arithmetic).
        m = jnp.max(a0, axis=1, keepdims=True)
        k = jnp.exp(a0 - m)  # the only N^2 exp in the kernel
        n = k.shape[0]

        def recip(x):
            # Approx reciprocal on EUP (cheap: length-N vectors only), then one
            # Newton step on the VPU to recover ~full f32 accuracy.
            r = pl.reciprocal(x, approx=True)
            return r * (2.0 - x * r)

        def sinkhorn_iter(uv):
            _, v = uv
            # Row normalize: u = 1 / (K @ v); lane-direction reduce.
            u = recip(jnp.sum(k * v, axis=1, keepdims=True))
            # Col normalize: v = 1 / (K^T @ u); sublane-direction reduce
            # (deliberately no transpose).
            v = recip(jnp.sum(k * u, axis=0, keepdims=True))
            return (u, v)

        uv = (jnp.ones((n, 1), jnp.float32), jnp.ones((1, n), jnp.float32))
        n_pairs, rem = divmod(it, 2)
        if n_pairs:
            # Manual 2x unroll of the loop body.
            def body(_, carry):
                return sinkhorn_iter(sinkhorn_iter(carry))

            uv = lax.fori_loop(0, n_pairs, body, uv)
        for _ in range(rem):  # trace-time peel for odd `it`
            uv = sinkhorn_iter(uv)

        u, v = uv
        out_ref[...] = (k * v) * u  # DS = diag(u) K diag(v)

    return kernel


def got_forward(mean: jax.Array, std: jax.Array, eps: jax.Array,
                tau: float = 2.0, it: int = 30) -> jax.Array:
    """Pallas-backed GOT.forward(eps).

    eps may be (nodes, nodes) (module semantics) or (batch, nodes, nodes);
    the batch axis is run as a "parallel" grid dimension.
    """
    mean = jnp.asarray(mean, jnp.float32)
    std = jnp.asarray(std, jnp.float32)
    eps = jnp.asarray(eps, jnp.float32)

    nodes = mean.shape[0]
    assert mean.shape == (nodes, nodes) and std.shape == (nodes, nodes)

    squeeze = eps.ndim == 2
    if squeeze:
        eps = eps[None]
    batch = eps.shape[0]
    assert eps.shape == (batch, nodes, nodes)

    kernel = make_got_kernel(tau, it)

    nn_bytes = 4 * nodes * nodes
    cost = pl.CostEstimate(
        flops=int(batch * (4 * it + 8) * nodes * nodes),
        transcendentals=int(batch * (nodes * nodes + 2 * nodes * it)),
        bytes_accessed=int((2 + 2 * batch) * nn_bytes),
    )

    out = pl.pallas_call(
        kernel,
        out_shape=jax.ShapeDtypeStruct((batch, nodes, nodes), jnp.float32),
        grid=(batch,),
        in_specs=[
            pl.BlockSpec((nodes, nodes), lambda b: (0, 0)),        # mean
            pl.BlockSpec((nodes, nodes), lambda b: (0, 0)),        # std
            pl.BlockSpec((None, nodes, nodes), lambda b: (b, 0, 0)),  # eps
        ],
        out_specs=pl.BlockSpec((None, nodes, nodes), lambda b: (b, 0, 0)),
        compiler_params=pltpu.CompilerParams(
            dimension_semantics=("parallel",),
            # Real footprint is ~a dozen (nodes, nodes) f32 slabs; clamp to
            # 64 MiB so the same setting is valid on v7x.
            vmem_limit_bytes=int(min(64 * 2**20, max(16 * 2**20, 24 * nn_bytes))),
        ),
        cost_estimate=cost,
    )(mean, std, eps)

    return out[0] if squeeze else out


def got_forward_ref(mean, std, eps, tau=2.0, it=30):
    """Pure-JAX log-domain reference (mirrors the PyTorch module exactly)."""
    a = (mean + std * eps) / tau
    for _ in range(it):
        a = a - jax.nn.logsumexp(a, axis=1, keepdims=True)
        a = a - jax.nn.logsumexp(a, axis=0, keepdims=True)
    return jnp.exp(a)


if __name__ == "__main__":
    nodes, tau, it, batch = 16, 2.0, 30, 2

    key = jax.random.PRNGKey(0)
    k_mean, k_eps = jax.random.split(key)

    # Deterministic init mirroring the PyTorch module:
    #   mean ~ U[0, 1) of shape (nodes, nodes); std = 10 * ones.
    mean = jax.random.uniform(k_mean, (nodes, nodes), dtype=jnp.float32)
    std = 10.0 * jnp.ones((nodes, nodes), dtype=jnp.float32)
    # Two independent noise draws (batched "parallel" grid path).
    eps = jax.random.normal(k_eps, (batch, nodes, nodes), dtype=jnp.float32)

    ds = jax.block_until_ready(got_forward(mean, std, eps, tau=tau, it=it))
    assert ds.shape == (batch, nodes, nodes)

    # Unbatched path (module-faithful forward(eps) with eps (nodes, nodes)).
    ds0 = jax.block_until_ready(got_forward(mean, std, eps[0], tau=tau, it=it))
    assert ds0.shape == (nodes, nodes)
    assert jnp.allclose(ds0, ds[0], rtol=1e-5, atol=1e-6)

    # Check against the log-domain reference.  Linear- vs log-domain Sinkhorn
    # accumulate different f32 rounding over 30 iterations, so use a modest
    # relative tolerance.
    for b in range(batch):
        ref = got_forward_ref(mean, std, eps[b], tau=tau, it=it)
        assert jnp.allclose(ds[b], ref, rtol=2e-3, atol=1e-5), (
            f"mismatch vs reference (batch {b})")

    # The final Sinkhorn step is a column normalization, so column sums are ~1
    # by construction.  (Row sums are only ~1 at full convergence, which 30
    # iterations with std=10 noise do not guarantee to 1e-3 — true for the
    # reference as well — so they are not asserted.)
    assert jnp.allclose(jnp.sum(ds, axis=-2), 1.0, atol=1e-3)
    assert jnp.allclose(jnp.sum(ds0, axis=0), 1.0, atol=1e-3)

    print("KERNEL_OK")
</pallas_src>

<mosaic_0001>
module attributes {stable_mosaic.version = 11 : i64} {
  func.func @kernel(%arg0: i32, %arg1: memref<16x16xf32, #tpu.memory_space<vmem>>, %arg2: memref<16x16xf32, #tpu.memory_space<vmem>>, %arg3: memref<1x16x16xf32, #tpu.memory_space<vmem>>, %arg4: memref<1x16x16xf32, #tpu.memory_space<vmem>>) attributes {dimension_semantics = [#tpu.dimension_semantics<parallel>], iteration_bounds = array<i64: 2>, scalar_prefetch = 0 : i64, scratch_operands = 0 : i64, tpu.core_type = #tpu.core_type<tc>, window_params = [{pipeline_mode = #tpu.pipeline_mode<synchronous>, transform_indices = @transform_0, window_bounds = array<i64: 16, 16>}, {pipeline_mode = #tpu.pipeline_mode<synchronous>, transform_indices = @transform_1, window_bounds = array<i64: 16, 16>}, {transform_indices = @transform_2, window_bounds = array<i64: 1, 16, 16>}, {transform_indices = @transform_3, window_bounds = array<i64: 1, 16, 16>}]} {
    %c0 = arith.constant 0 : index
    %c0_0 = arith.constant 0 : index
    %0 = vector.load %arg1[%c0, %c0_0] : memref<16x16xf32, #tpu.memory_space<vmem>>, vector<16x16xf32>
    %c0_1 = arith.constant 0 : index
    %c0_2 = arith.constant 0 : index
    %1 = vector.load %arg2[%c0_1, %c0_2] : memref<16x16xf32, #tpu.memory_space<vmem>>, vector<16x16xf32>
    %c0_3 = arith.constant 0 : index
    %c0_4 = arith.constant 0 : index
    %c0_5 = arith.constant 0 : index
    %2 = vector.load %arg3[%c0_3, %c0_4, %c0_5] : memref<1x16x16xf32, #tpu.memory_space<vmem>>, vector<1x16x16xf32>
    %3 = vector.shape_cast %2 : vector<1x16x16xf32> to vector<16x16xf32>
    %4 = arith.mulf %1, %3 : vector<16x16xf32>
    %5 = arith.addf %0, %4 : vector<16x16xf32>
    %cst = arith.constant 5.000000e-01 : f32
    %6 = vector.broadcast %cst : f32 to vector<16x16xf32>
    %7 = arith.mulf %5, %6 : vector<16x16xf32>
    %cst_6 = arith.constant dense<0xFF800000> : vector<16xf32>
    %8 = vector.multi_reduction <maximumf>, %7, %cst_6 [1] : vector<16x16xf32> to vector<16xf32>
    %9 = vector.shape_cast %8 : vector<16xf32> to vector<16x1xf32>
    %10 = vector.broadcast %9 : vector<16x1xf32> to vector<16x16xf32>
    %11 = arith.subf %7, %10 : vector<16x16xf32>
    %12 = math.exp %11 : vector<16x16xf32>
    %cst_7 = arith.constant 1.000000e+00 : f32
    %13 = vector.broadcast %cst_7 : f32 to vector<16x1xf32>
    %cst_8 = arith.constant 1.000000e+00 : f32
    %14 = vector.broadcast %cst_8 : f32 to vector<1x16xf32>
    %c0_i32 = arith.constant 0 : i32
    %c15_i32 = arith.constant 15 : i32
    %15 = arith.addi %c0_i32, %c15_i32 : i32
    %c1_i32 = arith.constant 1 : i32
    %16:2 = scf.for %arg5 = %c0_i32 to %15 step %c1_i32 iter_args(%arg6 = %13, %arg7 = %14) -> (vector<16x1xf32>, vector<1x16xf32>)  : i32 {
      %24 = vector.broadcast %arg7 : vector<1x16xf32> to vector<16x16xf32>
      %25 = arith.mulf %12, %24 : vector<16x16xf32>
      %cst_12 = arith.constant dense<0.000000e+00> : vector<16xf32>
      %26 = vector.multi_reduction <add>, %25, %cst_12 [1] : vector<16x16xf32> to vector<16xf32>
      %27 = vector.shape_cast %26 : vector<16xf32> to vector<16x1xf32>
      %28 = tpu.reciprocal %27 {approx = true} : vector<16x1xf32> -> vector<16x1xf32>
      %29 = arith.mulf %27, %28 : vector<16x1xf32>
      %cst_13 = arith.constant 2.000000e+00 : f32
      %30 = vector.broadcast %cst_13 : f32 to vector<16x1xf32>
      %31 = arith.subf %30, %29 : vector<16x1xf32>
      %32 = arith.mulf %28, %31 : vector<16x1xf32>
      %33 = vector.broadcast %32 : vector<16x1xf32> to vector<16x16xf32>
      %34 = arith.mulf %12, %33 : vector<16x16xf32>
      %cst_14 = arith.constant dense<0.000000e+00> : vector<16xf32>
      %35 = vector.multi_reduction <add>, %34, %cst_14 [0] : vector<16x16xf32> to vector<16xf32>
      %36 = vector.shape_cast %35 : vector<16xf32> to vector<1x16xf32>
      %37 = tpu.reciprocal %36 {approx = true} : vector<1x16xf32> -> vector<1x16xf32>
      %38 = arith.mulf %36, %37 : vector<1x16xf32>
      %cst_15 = arith.constant 2.000000e+00 : f32
      %39 = vector.broadcast %cst_15 : f32 to vector<1x16xf32>
      %40 = arith.subf %39, %38 : vector<1x16xf32>
      %41 = arith.mulf %37, %40 : vector<1x16xf32>
      %42 = vector.broadcast %41 : vector<1x16xf32> to vector<16x16xf32>
      %43 = arith.mulf %12, %42 : vector<16x16xf32>
      %cst_16 = arith.constant dense<0.000000e+00> : vector<16xf32>
      %44 = vector.multi_reduction <add>, %43, %cst_16 [1] : vector<16x16xf32> to vector<16xf32>
      %45 = vector.shape_cast %44 : vector<16xf32> to vector<16x1xf32>
      %46 = tpu.reciprocal %45 {approx = true} : vector<16x1xf32> -> vector<16x1xf32>
      %47 = arith.mulf %45, %46 : vector<16x1xf32>
      %cst_17 = arith.constant 2.000000e+00 : f32
      %48 = vector.broadcast %cst_17 : f32 to vector<16x1xf32>
      %49 = arith.subf %48, %47 : vector<16x1xf32>
      %50 = arith.mulf %46, %49 : vector<16x1xf32>
      %51 = vector.broadcast %50 : vector<16x1xf32> to vector<16x16xf32>
      %52 = arith.mulf %12, %51 : vector<16x16xf32>
      %cst_18 = arith.constant dense<0.000000e+00> : vector<16xf32>
      %53 = vector.multi_reduction <add>, %52, %cst_18 [0] : vector<16x16xf32> to vector<16xf32>
      %54 = vector.shape_cast %53 : vector<16xf32> to vector<1x16xf32>
      %55 = tpu.reciprocal %54 {approx = true} : vector<1x16xf32> -> vector<1x16xf32>
      %56 = arith.mulf %54, %55 : vector<1x16xf32>
      %cst_19 = arith.constant 2.000000e+00 : f32
      %57 = vector.broadcast %cst_19 : f32 to vector<1x16xf32>
      %58 = arith.subf %57, %56 : vector<1x16xf32>
      %59 = arith.mulf %55, %58 : vector<1x16xf32>
      scf.yield %50, %59 : vector<16x1xf32>, vector<1x16xf32>
    }
    %17 = vector.broadcast %16#1 : vector<1x16xf32> to vector<16x16xf32>
    %18 = arith.mulf %12, %17 : vector<16x16xf32>
    %19 = vector.broadcast %16#0 : vector<16x1xf32> to vector<16x16xf32>
    %20 = arith.mulf %18, %19 : vector<16x16xf32>
    %c0_9 = arith.constant 0 : index
    %c0_10 = arith.constant 0 : index
    %c0_11 = arith.constant 0 : index
    %21 = vector.load %arg4[%c0_9, %c0_10, %c0_11] : memref<1x16x16xf32, #tpu.memory_space<vmem>>, vector<1x16x16xf32>
    %22 = vector.shape_cast %21 : vector<1x16x16xf32> to vector<16x16xf32>
    %23 = vector.shape_cast %20 : vector<16x16xf32> to vector<1x16x16xf32>
    tpu.vector_store %arg4[%c0_9, %c0_10, %c0_11], %23 {strides = array<i32>} : memref<1x16x16xf32, #tpu.memory_space<vmem>>, vector<1x16x16xf32>,
    return
  }
  func.func @transform_0(%arg0: i32) -> (i32, i32) {
    %c0_i32 = arith.constant 0 : i32
    %c0_i32_0 = arith.constant 0 : i32
    %c0_i32_1 = arith.constant 0 : i32
    return %c0_i32, %c0_i32_0 : i32, i32
  }
  func.func @transform_1(%arg0: i32) -> (i32, i32) {
    %c0_i32 = arith.constant 0 : i32
    %c0_i32_0 = arith.constant 0 : i32
    %c0_i32_1 = arith.constant 0 : i32
    return %c0_i32, %c0_i32_0 : i32, i32
  }
  func.func @transform_2(%arg0: i32) -> (i32, i32, i32) {
    %c0_i32 = arith.constant 0 : i32
    %c0_i32_0 = arith.constant 0 : i32
    %c0_i32_1 = arith.constant 0 : i32
    return %arg0, %c0_i32, %c0_i32_0 : i32, i32, i32
  }
  func.func @transform_3(%arg0: i32) -> (i32, i32, i32) {
    %c0_i32 = arith.constant 0 : i32
    %c0_i32_0 = arith.constant 0 : i32
    %c0_i32_1 = arith.constant 0 : i32
    return %arg0, %c0_i32, %c0_i32_0 : i32, i32, i32
  }
}

</mosaic_0001>

<bundles_post_ra>
// kernel: tpu_custom_call.1
= control target key start
LH: loop header
LB: loop body
LE: loop exit
PB: predicated region body
PF: predicated region fallthrough
CT: control target
= control target key end

     0   :  { %8 = vsyncpa [#allocation3], 0  ;;  %s1056_s0 = inlined_call_operand.hbm [shape: f32[16,16], index: 0, kind: input, shape index: {}]   ;;  %s1057_s1 = inlined_call_operand.hbm [shape: f32[16,16], index: 1, kind: input, shape index: {}]   ;;  %s1058_s2 = inlined_call_operand.hbm [shape: f32[2,16,16], index: 2, kind: input, shape index: {}]   ;;  %s1059_s3 = inlined_call_operand.hbm [shape: f32[2,16,16], index: 3, kind: output, shape index: {}]  }
   0x1   :  { %9 = vsyncpa [#allocation6], 0 }
   0x2   :  { %10 = vsyncpa [#allocation4], 0 }
   0x3   :  { %12 = vsyncpa [#allocation4 + $0x1], 0  ;;  %s767_s12 = smov 0   ;;  %s769_s13 = smov 0  }
   0x4   :  { %s771_s14 = smov 0   ;;  %s773_s15 = smov 0  }
   0x5 LB: > { %s788_s16 = sadd.s32 4294967295, %s729_s15   ;;  %s438_s17 = sadd.s32 4294967294, %s729_s15   ;;  %s729_s15 = sphi %s773_s15, %s1088_s15   ;;  %s725_s14 = sphi %s771_s14, %s1087_s14   ;;  %s721_s13 = sphi %s769_s13, %s1086_s13   ;;  %s717_s12 = sphi %s767_s12, %s1085_s12  }
   0x6   : > { %s792_s18 = sadd.s32 1, %s729_s15   ;;  %s67_s19 = sadd.s32 1, %s725_s14 }
   0x7   : > { %s64_s20 = ssub.s32 %s729_s15, %s792_s18  ;;  %p74_p0 = scmp.ne.s32.totalorder %s725_s14, %s721_s13 }
   0x8   : > { %p65_p1 = scmp.eq.s32.totalorder %s64_s20, 0  ;;  %p75_p2 = scmp.eq.s32.totalorder %s729_s15, 0 }
   0x9   : > { %p80_p3 = scmp.ne.s32.totalorder %s721_s13, %s717_s12  ;;  %p1060_p4 = scmp.eq.s32.totalorder %s788_s16, 0 }
   0xa   : > { %s804_s21 = scalar_select %p65_p1, %s725_s14, %s67_s19  }
   0xb   : > { %p806_p5 = por %p75_p2, %p74_p0  ;;  %p812_p6 = por %p1060_p4, %p80_p3 }
   0xc   : > { %p104_p7 = scmp.eq.s32.totalorder %s788_s16, 1  ;;  %p110_p8 = scmp.eq.s32.totalorder %s438_s17, 1 }
   0xd   : > { %s1065_s22 = scalar_select %p806_p5, 1, 0 }
   0xe   : > { %s1066_s23 = scalar_select %p812_p6, 1, 0 }
   0xf   : > { %p439_p9 = scmp.ge.s32.totalorder %s729_s15, 1  ;;  %p117_p10 = scmp.lt.s32.totalorder %s729_s15, 3 }
  0x10   : > { %p819_p11 = por %p104_p7, %p74_p0  ;;  %p823_p12 = por %p110_p8, %p80_p3 }
  0x11   : > { %p827_p13 = pnand %p439_p9, %p117_p10  ;;  %s739_s27 = smov [#allocation2]  }
  0x12   : > { %s1067_s24 = scalar_select %p819_p11, 1, 0 }
  0x13   : > { %s1068_s25 = scalar_select %p823_p12, 1, 0 }
  0x14   : > { %s1069_s26 = scalar_select %p827_p13, 1, 0 }
  0x15   : > { %p470_p1 = pneg %p827_p13  ;;  %s129_s28 = sshll.u32 %s739_s27, 4  ;;  %s130_s28 = int_to_ptr.vmem [resolvable:$true] %s129_s28 }
  0x16   : > { %s740_s30 = smov [#allocation5]   ;;  %s561_s7 = scalar_lea.hbm %s1056_s0, 256 }
  0x17   : > { %p835_p2 = pnand %p470_p1, %p1060_p4  ;;  %s142_s4 = sshll.u32 %s740_s30, 4  ;;  %s143_s4 = int_to_ptr.vmem [resolvable:$true] %s142_s4 }
  0x18   : > { %p562_p7 = scmp.ne.s32.totalorder %s1056_s0, %s561_s7  ;;  %p568_p1 = scmp.lt.u32.totalorder %s561_s7, %s1056_s0 }
  0x19   : > { %p563_p8 = pneg %p835_p2 }
  0x1b   : > { %p564_p9 = pnand %p563_p8, %p562_p7 }
  0x1d   : > { %p565_p10 = pneg %p564_p9 }
  0x1f   : > { %p570_p0 = pnand %p568_p1, %p565_p10 }
  0x21   : > { %573 = shalt.err (!%p570_p0)
}
  0x22   : > { %s574_s17 = scalar_lea.vmem %s130_s28, 256  ;;  %p582_p11 = scmp.lt.s32.totalorder %s130_s28, %s130_s28 }
  0x23   : > { %p575_p4 = scmp.ne.s32.totalorder %s130_s28, %s574_s17  ;;  %p583_p6 = scmp.lt.s32.totalorder %s574_s17, %s574_s17 }
  0x25   : > { %p577_p3 = pnand %p575_p4, %p563_p8  ;;  %p584_p13 = por %p583_p6, %p582_p11 }
  0x27   : > { %p578_p12 = pneg %p577_p3 }
  0x29   : > { %p585_p5 = pnand %p584_p13, %p578_p12 }
  0x2b   : > { %588 = shalt.err (!%p585_p5)
}
  0x2c   : > { %s741_s19 = smov 128   ;;  %s742_s20 = smov 8  }
  0x2d   : > { %473 = dma.hbm_to_vmem [thread:$0]  (!%p835_p2), %s1056_s0, 256, %s130_s28, [#allocation3], %s741_s19, %s741_s19, %s742_s20  }
  0x2e   : > { %p1071_p4 = scmp.ne.s32.totalorder %s1065_s22, 0  ;;  %p1072_p0 = scmp.lt.s32.totalorder %s729_s15, 2 }
  0x2f   : > { %s589_s8 = scalar_lea.hbm %s1057_s1, 256 }
  0x30   : > { %p870_p3 = pnand %p1072_p0, %p1071_p4  ;;  %p590_p5 = scmp.ne.s32.totalorder %s1057_s1, %s589_s8 }
  0x31   : > { %p596_p12 = scmp.lt.u32.totalorder %s589_s8, %s1057_s1 }
  0x32   : > { %s1073_s5 = scalar_select %p870_p3, 1, 0 }
  0x33   : > { %p592_p6 = pnand %p590_p5, %p563_p8 }
  0x35   : > { %p593_p11 = pneg %p592_p6 }
  0x37   : > { %p598_p13 = pnand %p596_p12, %p593_p11 }
  0x39   : > { %601 = shalt.err (!%p598_p13)
}
  0x3a   : > { %s602_s11 = scalar_lea.vmem %s143_s4, 256  ;;  %p610_p1 = scmp.lt.s32.totalorder %s143_s4, %s143_s4 }
  0x3b   : > { %p603_p7 = scmp.ne.s32.totalorder %s143_s4, %s602_s11  ;;  %p611_p4 = scmp.lt.s32.totalorder %s602_s11, %s602_s11 }
  0x3d   : > { %p605_p9 = pnand %p603_p7, %p563_p8  ;;  %p612_p0 = por %p611_p4, %p610_p1 }
  0x3f   : > { %p606_p10 = pneg %p605_p9 }
  0x41   : > { %p613_p3 = pnand %p612_p0, %p606_p10 }
  0x43   : > { %616 = shalt.err (!%p613_p3)
}
  0x44   : > { %476 = dma.hbm_to_vmem [thread:$0]  (!%p835_p2), %s1057_s1, 256, %s143_s4, [#allocation6], %s741_s19, %s741_s19, %s742_s20  }
  0x45   : > { %s156_s30 = sand.u32 1, %s729_s15   ;;  %s158_s6 = sand.u32 1, %s725_s14  }
  0x46   : > { %s443_s7 = sshll.u32 %s158_s6, 4  ;;  %s456_s8 = sshll.u32 %s729_s15, 8 }
  0x47   : > { %s903_s29 = scalar_lea.hbm %s1058_s2, %s456_s8  ;;  %s160_s28 = scalar_lea.vmem [#allocation7], %s443_s7 }
  0x48   : > { %s167_s22 = sshll.u32 %s160_s28, 4  ;;  %s907_s11 = scalar_lea.sflag [#allocation3], %s156_s30  ;;  %s905_s22 = int_to_ptr.vmem [resolvable:$true] %s167_s22 }
  0x49   : > { %s617_s4 = scalar_lea.hbm %s903_s29, 256  ;;  %p1074_p8 = scmp.ne.s32.totalorder %s1073_s5, 0 }
  0x4a   : > { %p618_p2 = scmp.ne.s32.totalorder %s903_s29, %s617_s4  ;;  %s622_s6 = scalar_lea.hbm %s1058_s2, 512 }
  0x4b   : > { %p619_p3 = pneg %p1074_p8  ;;  %p623_p11 = scmp.lt.u32.totalorder %s903_s29, %s1058_s2 }
  0x4c   : > { %p624_p12 = scmp.lt.u32.totalorder %s622_s6, %s617_s4  ;;  %p626_p7 = scmp.lt.u32.totalorder %s617_s4, %s903_s29 }
  0x4d   : > { %p620_p5 = pnand %p619_p3, %p618_p2 }
  0x4e   : > { %p625_p13 = por %p624_p12, %p623_p11 }
  0x4f   : > { %p621_p6 = pneg %p620_p5 }
  0x50   : > { %p627_p9 = por %p626_p7, %p625_p13 }
  0x52   : > { %p628_p10 = pnand %p627_p9, %p621_p6 }
  0x54   : > { %631 = shalt.err (!%p628_p10)
}
  0x55   : > { %s632_s30 = scalar_lea.vmem %s905_s22, 256  ;;  %s743_s7 = smov [#allocation7]  }
  0x56   : > { %p633_p1 = scmp.ne.s32.totalorder %s905_s22, %s632_s30  ;;  %s637_s10 = sshll.u32 %s743_s7, 4  ;;  %s638_s10 = int_to_ptr.vmem [resolvable:$false] %s637_s10 }
  0x57   : > { %s639_s28 = scalar_lea.vmem %s638_s10, 512  ;;  %p640_p2 = scmp.lt.s32.totalorder %s905_s22, %s638_s10 }
  0x58   : > { %p635_p4 = pnand %p633_p1, %p619_p3  ;;  %p641_p5 = scmp.lt.s32.totalorder %s639_s28, %s632_s30 }
  0x5a   : > { %p636_p0 = pneg %p635_p4  ;;  %p642_p11 = por %p641_p5, %p640_p2 }
  0x5c   : > { %p643_p12 = pnand %p642_p11, %p636_p0 }
  0x5e   : > { %646 = shalt.err (!%p643_p12)
}
  0x5f   : > { %480 = dma.hbm_to_vmem [thread:$0]  (!%p1074_p8), %s903_s29, 256, %s905_s22, %s907_s11, %s741_s19, %s741_s19, %s742_s20  }
  0x60   : > { %p1075_p3 = scmp.ne.s32.totalorder %s1069_s26, 0 }
  0x61   : > { %p1076_p6 = scmp.eq.s32.totalorder (!%p1075_p3), %s788_s16, 0 }
  0x62   : > { %179 = sbr.rel (%p1075_p3) target bundleno = 703 (0x2bf), region = 32 }
  0x69   : > { %700 = dma.done.wait (%p1076_p6), [#allocation3], 256   ;;  %p1077_p13 = pmov %p1076_p6 }
  0x6a   : > { %p1078_p7 = pmov %p1076_p6 }
  0x6b   : > { %702 = vsyncadd (%p1077_p13), [#allocation3], 4294967040 }
  0x6c   : > { %704 = dma.done.wait (%p1078_p7), [#allocation6], 256   ;;  %p1079_p9 = pmov %p1076_p6 }
  0x6d   : > { %s189_s19 = sand.u32 1, %s788_s16   ;;  %s191_s20 = sand.u32 1, %s721_s13  }
  0x6e   : > { %706 = vsyncadd (%p1079_p9), [#allocation6], 4294967040  ;;  %s952_s26 = sshll.u32 %s191_s20, 4  ;;  %s190_s5 = scalar_lea.sflag [#allocation3], %s189_s19 }
  0x6f   : > { %s193_s29 = scalar_lea.vmem [#allocation7], %s952_s26  ;;  %p1080_p8 = scmp.ne.s32.totalorder %s1066_s23, 0 }
  0x71   : > { %708 = dma.done.wait (%p1080_p8), %s190_s5, 256  }
  0x72   : > { %710 = vsyncadd (%p1080_p8), %s190_s5, 4294967040  ;;  %v216_v0 = vld [vmem:[#allocation2] sm:$0xff]  ;;  %v218_v1 = vld [vmem:[#allocation5] sm:$0xff]  ;;  %vm228_vm0 = vcmask 130048   ;;  %s966_s23 = scalar_lea.vmem [#allocation8], %s952_s26  ;;  %v968_v22 = vmov 1.0  }
  0x73   : > { %v220_v2 = vld [vmem:[%s193_s29] sm:$0xff]  ;;  %v217_v4 = vld [vmem:[#allocation2 + $0x8] sm:$0xff]  ;;  %v219_v5 = vld [vmem:[#allocation5 + $0x8] sm:$0xff]  ;;  %s970_s22 = smov 0  }
  0x74   : > { %v222_v3 = vmul.f32 %v220_v2, %v218_v1  ;;  %v221_v6 = vld [vmem:[%s193_s29 + $0x8] sm:$0xff] }
  0x75   : > { %v223_v7 = vmul.f32 %v221_v6, %v219_v5 }
  0x76   : > { %v224_v8 = vadd.f32 %v222_v3, %v216_v0 }
  0x77   : > { %v225_v9 = vadd.f32 %v223_v7, %v217_v4 }
  0x78   : > { %v226_v10 = vmul.f32 0.5, %v224_v8 }
  0x79   : > { %v227_v11 = vmul.f32 0.5, %v225_v9 }
  0x7a   : > { %v229_v12 = vsel %vm228_vm0, %v226_v10, -inf }
  0x7b   : > { %230 = vmax.xlane.f32.xlu0 %v229_v12  ;;  %v232_v13 = vsel %vm228_vm0, %v227_v11, -inf }
  0x7f   : > { %233 = vmax.xlane.f32.xlu0 %v232_v13 }
 0x108   : > { %v231_v14 = vpop.xlane.xlu0 %230 }
 0x109   : > { %v235_v15 = vsub.f32 %v226_v10, %v231_v14 }
 0x10b   : > { %v237_v16 = vmul.f32 1.442695, %v235_v15 }
 0x10c   : > { %v234_v17 = vpop.xlane.xlu0 %233 }
 0x10d   : > { %545 = vpow2.f32 %v237_v16  ;;  %v236_v18 = vsub.f32 %v227_v11, %v234_v17 }
 0x10f   : > { %v239_v19 = vmul.f32 1.442695, %v236_v18 }
 0x111   : > { %547 = vpow2.f32 %v239_v19 }
 0x117   : > { %v961_v20 = vpop.eup %545 }
 0x11b   : > { %v963_v21 = vpop.eup %547 }
 0x11c LB: >> { %v250_v23 = vmul.f32 %v733_v22, %v961_v20  ;;  %v251_v24 = vmul.f32 %v733_v22, %v963_v21  ;;  %s246_s22 = sadd.s32 1, %s737_s22   ;;  %s737_s22 = sphi %s970_s22, %s246_s22   ;;  %v733_v22 = vphi %v968_v22, %v1081_v22  }
 0x11d   : >> { %p243_p10 = scmp.ge.s32.totalorder %s246_s22, 15  }
 0x11e   : >> { %v252_v25 = vsel %vm228_vm0, %v250_v23, 0.0  ;;  %v255_v26 = vsel %vm228_vm0, %v251_v24, 0.0  ;;  %s457_s11 = sshll.u32 (%p243_p10), %s788_s16, 8  ;;  %s332_s6 = sshll.u32 (%p243_p10), %s966_s23, 4  ;;  %s1006_s6 = int_to_ptr.vmem [resolvable:$true] %s332_s6 }
 0x11f   : >> { %253 = vadd.xlane.f32.xlu0 %v252_v25  ;;  %s1003_s27 = scalar_lea.hbm (%p243_p10), %s1059_s3, %s457_s11  ;;  %s1014_s8 = scalar_lea.sflag (%p243_p10), [#allocation4], %s191_s20 }
 0x120   : > { %s647_s16 = scalar_lea.vmem (%p243_p10), %s1006_s6, 256  ;;  %p1082_p4 = scmp.ne.s32.totalorder (%p243_p10), %s1067_s24, 0 }
 0x121   : > { %p648_p1 = scmp.ne.s32.totalorder (%p243_p10), %s1006_s6, %s647_s16  ;;  %s744_s9 = smov (%p243_p10), [#allocation8]  }
 0x122   : > { %s651_s30 = sshll.u32 (%p243_p10), %s744_s9, 4  ;;  %s652_s30 = int_to_ptr.vmem [resolvable:$false] %s651_s30 }
 0x123   : >> { %256 = vadd.xlane.f32.xlu0 %v255_v26  ;;  %p649_p0 = pnand (%p243_p10), %p648_p1, %p1082_p4  ;;  %s653_s7 = scalar_lea.vmem (%p243_p10), %s652_s30, 512 }
 0x124   : > { %p654_p5 = scmp.lt.s32.totalorder (%p243_p10), %s1006_s6, %s652_s30  ;;  %p655_p11 = scmp.lt.s32.totalorder (%p243_p10), %s653_s7, %s647_s16 }
 0x125   : > { %p650_p2 = pneg (%p243_p10), %p649_p0 }
 0x126   : > { %p656_p12 = por (%p243_p10), %p655_p11, %p654_p5 }
 0x128   : > { %p657_p3 = pnand (%p243_p10), %p656_p12, %p650_p2 }
 0x1ac   : >> { %v254_v27 = vpop.xlane.xlu0 %253 }
 0x1ad   : >> { %549 = vrcp.f32 %v254_v27 }
 0x1b0   : >> { %v257_v28 = vpop.xlane.xlu0 %256 }
 0x1b1   : >> { %551 = vrcp.f32 %v257_v28 }
 0x1b7   : >> { %v550_v29 = vpop.eup %549 }
 0x1b8   : >> { %v260_v30 = vmul.f32 %v550_v29, %v254_v27 }
 0x1ba   : >> { %v262_v31 = vsub.f32 2.0, %v260_v30 }
 0x1bb   : >> { %v552_v32 = vpop.eup %551 }
 0x1bc   : >> { %v264_v33 = vmul.f32 %v550_v29, %v262_v31  ;;  %v261_v34 = vmul.f32 %v552_v32, %v257_v28 }
 0x1be   : >> { %v263_v35 = vsub.f32 2.0, %v261_v34  ;;  %v266_v36 = vmul.f32 %v961_v20, %v264_v33 }
 0x1c0   : >> { %v265_v37 = vmul.f32 %v552_v32, %v263_v35  ;;  %v268_v39 = vsel %vm228_vm0, %v266_v36, 0.0 }
 0x1c2   : >> { %v267_v38 = vmul.f32 %v963_v21, %v265_v37 }
 0x1c4   : >> { %v269_v40 = vsel %vm228_vm0, %v267_v38, 0.0 }
 0x1c5   : >> { %v270_v41 = vadd.f32 %v269_v40, %v268_v39 }
 0x1c7   : >> { %v271_v42 = vrot.slane %v270_v41, 4 }
 0x1c9   : >> { %v272_v43 = vadd.f32 %v271_v42, %v270_v41 }
 0x1cb   : >> { %v273_v44 = vrot.slane %v272_v43, 2 }
 0x1cd   : >> { %v274_v45 = vadd.f32 %v273_v44, %v272_v43 }
 0x1cf   : >> { %v275_v46 = vrot.slane %v274_v45, 1 }
 0x1d1   : >> { %v276_v47 = vadd.f32 %v275_v46, %v274_v45 }
 0x1d3   : >> { %553 = vrcp.f32 %v276_v47 }
 0x1dd   : >> { %v554_v48 = vpop.eup %553 }
 0x1de   : >> { %v278_v49 = vmul.f32 %v554_v48, %v276_v47 }
 0x1e0   : >> { %v279_v50 = vsub.f32 2.0, %v278_v49 }
 0x1e2   : >> { %v280_v51 = vmul.f32 %v554_v48, %v279_v50 }
 0x1e4   : >> { %v281_v52 = vmul.f32 %v961_v20, %v280_v51  ;;  %v282_v54 = vmul.f32 %v963_v21, %v280_v51 }
 0x1e6   : >> { %v283_v53 = vsel %vm228_vm0, %v281_v52, 0.0  ;;  %v286_v55 = vsel %vm228_vm0, %v282_v54, 0.0 }
 0x1e7   : >> { %284 = vadd.xlane.f32.xlu1 %v283_v53 }
 0x1eb   : >> { %287 = vadd.xlane.f32.xlu1 %v286_v55 }
 0x274   : >> { %v285_v56 = vpop.xlane.xlu1 %284 }
 0x275   : >> { %555 = vrcp.f32 %v285_v56 }
 0x278   : >> { %v288_v57 = vpop.xlane.xlu1 %287 }
 0x279   : >> { %557 = vrcp.f32 %v288_v57 }
 0x27f   : >> { %v556_v58 = vpop.eup %555 }
 0x280   : >> { %v291_v59 = vmul.f32 %v556_v58, %v285_v56 }
 0x282   : >> { %v293_v60 = vsub.f32 2.0, %v291_v59 }
 0x283   : >> { %v558_v61 = vpop.eup %557 }
 0x284   : >> { %v295_v62 = vmul.f32 %v556_v58, %v293_v60  ;;  %v292_v63 = vmul.f32 %v558_v61, %v288_v57 }
 0x286   : >> { %v294_v0 = vsub.f32 2.0, %v292_v63  ;;  %v297_v1 = vmul.f32 %v961_v20, %v295_v62 }
 0x288   : >> { %v296_v2 = vmul.f32 %v558_v61, %v294_v0  ;;  %v299_v4 = vsel %vm228_vm0, %v297_v1, 0.0 }
 0x28a   : >> { %v298_v3 = vmul.f32 %v963_v21, %v296_v2 }
 0x28c   : >> { %v300_v5 = vsel %vm228_vm0, %v298_v3, 0.0 }
 0x28d   : >> { %v301_v6 = vadd.f32 %v300_v5, %v299_v4 }
 0x28f   : >> { %v302_v7 = vrot.slane %v301_v6, 4 }
 0x291   : >> { %v303_v8 = vadd.f32 %v302_v7, %v301_v6 }
 0x293   : >> { %v304_v9 = vrot.slane %v303_v8, 2 }
 0x295   : >> { %v305_v10 = vadd.f32 %v304_v9, %v303_v8 }
 0x297   : >> { %v306_v11 = vrot.slane %v305_v10, 1 }
 0x299   : >> { %v307_v12 = vadd.f32 %v306_v11, %v305_v10 }
 0x29b   : >> { %559 = vrcp.f32 %v307_v12 }
 0x2a5   : >> { %v560_v13 = vpop.eup %559 }
 0x2a6   : >> { %v309_v14 = vmul.f32 %v560_v13, %v307_v12  ;;  %245 = sbr.rel (!%p243_p10) target bundleno = 284 (0x11c), region = 91 }
 0x2a8   : >> { %v310_v15 = vsub.f32 2.0, %v309_v14 }
 0x2aa   : >> { %v311_v16 = vmul.f32 %v560_v13, %v310_v15  }
 0x2ac   : >> { %v1081_v22 = vmov %v311_v16  ;;  %v312_v17 = vmul.f32 (%p243_p10), %v961_v20, %v311_v16  ;;  %v313_v18 = vmul.f32 (%p243_p10), %v963_v21, %v311_v16 }
 0x2ae   : > { %v314_v19 = vmul.f32 %v312_v17, %v295_v62  ;;  %v315_v22 = vmul.f32 %v313_v18, %v296_v2 }
 0x2b0   : > { %316 = vst.msk [vmem:[%s966_s23] sm:$0xff] %vm228_vm0, %v314_v19  ;;  %317 = vst.msk [vmem:[%s966_s23 + $0x8] sm:$0xff] %vm228_vm0, %v315_v22 }
 0x2b1   : > { %660 = shalt.err (!%p657_p3)
}
 0x2b2   : > { %s661_s10 = scalar_lea.hbm %s1003_s27, 256  ;;  %s665_s20 = scalar_lea.hbm %s1059_s3, 512 }
 0x2b3   : > { %p662_p6 = scmp.ne.s32.totalorder %s1003_s27, %s661_s10  ;;  %p666_p9 = scmp.lt.u32.totalorder %s1003_s27, %s1059_s3 }
 0x2b4   : > { %p667_p8 = scmp.lt.u32.totalorder %s665_s20, %s661_s10  ;;  %p669_p1 = scmp.lt.u32.totalorder %s661_s10, %s1003_s27 }
 0x2b5   : > { %p663_p13 = pnand %p662_p6, %p1082_p4 }
 0x2b6   : > { %p668_p10 = por %p667_p8, %p666_p9 }
 0x2b7   : > { %p664_p7 = pneg %p663_p13 }
 0x2b8   : > { %p670_p0 = por %p669_p1, %p668_p10 }
 0x2ba   : > { %p671_p2 = pnand %p670_p0, %p664_p7 }
 0x2bc   : > { %674 = shalt.err (!%p671_p2)
}
 0x2bd   : > { %s745_s29 = smov 128   ;;  %s746_s23 = smov 8  }
 0x2be   : > { %468 = dma.vmem_to_hbm [thread:$0]  (%p1082_p4), %s1006_s6, 256, %s1003_s27, %s1014_s8, %s745_s29, %s745_s29, %s746_s23  }
 0x2bf PF: > { %s347_s22 = sand.u32 1, %s717_s12   ;;  %p1083_p5 = scmp.ne.s32.totalorder %s1068_s25, 0 }
 0x2c0   : > { %p1084_p11 = scmp.ge.s32.totalorder %s729_s15, 2  ;;  %s348_s11 = scalar_lea.sflag [#allocation4], %s347_s22 }
 0x2c2   : > { %p482_p12 = pnand %p1084_p11, %p1083_p5 }
 0x2c4   : > { %712 = dma.done.wait (!%p482_p12), %s348_s11, 256  }
 0x2c5   : > { %714 = vsyncadd (!%p482_p12), %s348_s11, 4294967040  ;;  %p15_p3 = scmp.ge.s32.totalorder %s792_s18, 4   ;;  %s1085_s12 = smov %s721_s13 }
 0x2c6   : > { %s1086_s13 = smov %s725_s14  ;;  %s1087_s14 = smov %s804_s21 }
 0x2c7   : > { %s1088_s15 = smov %s792_s18  ;;  %17 = sbr.rel (!%p15_p3) target bundleno = 5 (0x5), region = 102 }
 0x2ce   :  { %353 = vsyncpa [#allocation3], 1 }
 0x2cf   :  { %355 = vsyncpa [#allocation3 + $0x1], 1 }
 0x2d0   :  { %356 = vsyncpa [#allocation6], 1 }
 0x2d1   :  { %357 = vsyncpa [#allocation4], 1 }
 0x2d2   :  { %359 = vsyncpa [#allocation4 + $0x1], 1 }

</bundles_post_ra>
